<compile_context>
chip_gen: v6e
topology: v6e:2x2x1
jax: 0.10.0
libtpu: 0.0.40
codegen_flags: <defaults>
</compile_context>

<pallas_src>
import functools
from typing import Dict, Optional

import numpy as np
import jax
import jax.numpy as jnp
from jax.experimental import pallas as pl
from jax.experimental.pallas import tpu as pltpu

_LANE = 128


def _cdiv(a: int, b: int) -> int:
    return (a + b - 1) // b


# ----------------------------------------------------------------------------- #
# Kernel 1: ragged (values, offsets) -> dense padded rows (windowed gather)
# ----------------------------------------------------------------------------- #
def _ragged_pad_kernel(offs_ref, vals_hbm, out_ref, wbuf, sems,
                       *, num_rows, rows_per_block, k_chunks, out_lanes):
    i = pl.program_id(0)
    R, K = rows_per_block, k_chunks

    # ---- issue one 128-aligned window DMA per row of this block (all in flight) ----
    copies = []
    row_meta = []
    for r in range(R):
        row = jnp.minimum(i * R + r, num_rows - 1)      # clamp rows of a partial last block
        start = offs_ref[row]
        length = offs_ref[row + 1] - start
        s_row = start // _LANE                          # window start, in 128-element rows
        c = start - s_row * _LANE                       # intra-window lane offset, in [0, 128)
        cp = pltpu.make_async_copy(
            vals_hbm.at[pl.ds(s_row, K + 1), :], wbuf.at[r], sems.at[r])
        cp.start()
        copies.append(cp)
        row_meta.append((c, length))

    # hoisted constants (JAX does not CSE broadcast_in_dim)
    lane = jax.lax.broadcasted_iota(jnp.int32, (1, _LANE), 1)

    rows_out = []
    for r in range(R):
        copies[r].wait()
        c, length = row_meta[r]
        w = wbuf[r]                                     # (K+1, 128) aligned value window

        # Align the window so a[q, l] == values[start + q*128 + l] for l < 128 - c and
        # a[q+1, l] holds it for l >= 128 - c.  The rotate amount is dynamic; a rolled-iota
        # probe selects whichever rotate direction convention the backend implements.
        shift = (_LANE - c) % _LANE
        want = lane + c - jnp.where(lane + c >= _LANE, _LANE, 0)   # (l + c) mod 128
        a_fwd = pltpu.roll(w, shift, axis=1)
        a_bwd = pltpu.roll(w, c, axis=1)
        probe = pltpu.roll(lane, shift, axis=1)
        a = jnp.where(probe == want, a_fwd, a_bwd)      # a[q, l] = w[q, (l + c) % 128]

        take_hi = lane >= (_LANE - c)                   # lanes that wrapped into row q+1
        for q in range(K):
            chunk = jnp.where(take_hi, a[q + 1:q + 2, :], a[q:q + 1, :])
            valid = (lane + q * _LANE) < length
            chunk = jnp.where(valid, chunk, jnp.zeros_like(chunk))
            if out_lanes != _LANE:
                chunk = chunk[:, :out_lanes]
            rows_out.append(chunk)

    # single dense store of the whole (R*K, out_lanes) output block
    block = rows_out[0] if len(rows_out) == 1 else jnp.concatenate(rows_out, axis=0)
    out_ref[...] = block


def _pad_ragged_pallas(values: jax.Array, offsets: jax.Array, padding_length: int) -> jax.Array:
    n = int(values.shape[0])
    b = int(offsets.shape[0]) - 1
    k = max(1, _cdiv(padding_length, _LANE))
    out_lanes = padding_length if k == 1 else _LANE

    # rows per grid step: sublane-dense (>=8) blocks, capped so the per-step store stays small
    if b < 8:
        rpb = b
    else:
        rpb = min((b // 8) * 8, 32, max(8, (64 // k) // 8 * 8))
    grid = _cdiv(b, rpb)

    # zero-pad values so every (K+1)*128 aligned window is in bounds; lane-dense (rows, 128)
    n_rows = n // _LANE + k + 1
    vals2d = (jnp.zeros((n_rows * _LANE,), values.dtype)
              .at[:n].set(values)
              .reshape(n_rows, _LANE))

    kernel = functools.partial(
        _ragged_pad_kernel, num_rows=b, rows_per_block=rpb, k_chunks=k, out_lanes=out_lanes)

    out2d = pl.pallas_call(
        kernel,
        out_shape=jax.ShapeDtypeStruct((b * k, out_lanes), values.dtype),
        grid_spec=pltpu.PrefetchScalarGridSpec(
            num_scalar_prefetch=1,
            grid=(grid,),
            in_specs=[pl.BlockSpec(memory_space=pl.ANY)],        # values stay in HBM, manual DMA
            out_specs=pl.BlockSpec((rpb * k, out_lanes), lambda i, offs: (i, 0)),
            scratch_shapes=[
                pltpu.VMEM((rpb, k + 1, _LANE), values.dtype),
                pltpu.SemaphoreType.DMA((rpb,)),
            ],
        ),
        compiler_params=pltpu.CompilerParams(dimension_semantics=("parallel",)),
    )(offsets, vals2d)

    if k == 1:
        return out2d                                   # already (b, padding_length), no slice copy
    out = out2d.reshape(b, k * _LANE)                  # free row-major metadata reshape
    if k * _LANE != padding_length:
        out = out[:, :padding_length]                  # only when padding_length % 128 != 0
    return out


def _pad_ragged_xla(values: jax.Array, offsets: jax.Array, padding_length: int) -> jax.Array:
    # Pure-XLA safety net, used only if the Pallas kernel fails to lower on this backend.
    lens = offsets[1:] - offsets[:-1]
    starts = offsets[:-1]
    j = jnp.arange(padding_length, dtype=jnp.int32)[None, :]
    vals = values if values.shape[0] > 0 else jnp.zeros((1,), values.dtype)
    idx = jnp.clip(starts[:, None] + j, 0, vals.shape[0] - 1)
    out = jnp.take(vals, idx, axis=0)
    return jnp.where(j < lens[:, None], out, jnp.zeros_like(out))


_RAGGED_PALLAS_OK: Optional[bool] = None


def pad_ragged_tensor(values: jax.Array, offsets: jax.Array, padding_length: int) -> jax.Array:
    """Equivalent of TabularPaddingModule._pad_ragged_tensor (+ pad/truncate to padding_length)."""
    global _RAGGED_PALLAS_OK
    values = values.reshape(-1)                        # _squeeze
    offsets = offsets.reshape(-1).astype(jnp.int32)
    padding_length = int(padding_length)

    if _RAGGED_PALLAS_OK is None:
        try:
            out = _pad_ragged_pallas(values, offsets, padding_length)
            jax.block_until_ready(out)
            _RAGGED_PALLAS_OK = True
            return out
        except Exception:                              # backend safety net only
            _RAGGED_PALLAS_OK = False
    if _RAGGED_PALLAS_OK:
        return _pad_ragged_pallas(values, offsets, padding_length)
    return _pad_ragged_xla(values, offsets, padding_length)


# ----------------------------------------------------------------------------- #
# Kernel 2: dense [B, T] -> zero-padded [B, padding_length] + non-padding counts
# ----------------------------------------------------------------------------- #
def _dense_pad_kernel(x_ref, out_ref, len_ref, *, padding_length):
    x = x_ref[...]                                     # (rows, T)
    t = x.shape[1]
    if padding_length > t:
        zeros = jnp.zeros((x.shape[0], padding_length - t), x.dtype)
        out_ref[...] = jnp.concatenate([x, zeros], axis=1)   # single lane-dense store
    elif padding_length < t:
        out_ref[...] = x[:, :padding_length]                 # truncation (negative F.pad)
    else:
        out_ref[...] = x
    # sequence length = count of entries != padding_idx over the *original* row, as in the
    # reference _get_sequence_lengths (genuine zeros are therefore not counted, by design).
    len_ref[...] = jnp.sum((x != 0).astype(jnp.int32), axis=-1, keepdims=True)


def pad_dense_tensor(x: jax.Array, padding_length: int):
    """Equivalent of _pad_dense_tensor; also returns (x != padding_idx).sum(-1) per row."""
    if x.ndim != 2:
        return x, None
    b, t = int(x.shape[0]), int(x.shape[1])
    padding_length = int(padding_length)
    rows = b if b < 8 else min(512, (b // 8) * 8)
    grid = _cdiv(b, rows)

    padded, lengths = pl.pallas_call(
        functools.partial(_dense_pad_kernel, padding_length=padding_length),
        out_shape=(
            jax.ShapeDtypeStruct((b, padding_length), x.dtype),
            jax.ShapeDtypeStruct((b, 1), jnp.int32),
        ),
        grid=(grid,),
        in_specs=[pl.BlockSpec((rows, t), lambda i: (i, 0))],
        out_specs=(
            pl.BlockSpec((rows, padding_length), lambda i: (i, 0)),
            pl.BlockSpec((rows, 1), lambda i: (i, 0)),
        ),
        compiler_params=pltpu.CompilerParams(dimension_semantics=("parallel",)),
    )(x)
    return padded, lengths[:, 0]


# ----------------------------------------------------------------------------- #
# Module wrapper (host-side glue reproducing TabularPaddingModule.forward)
# ----------------------------------------------------------------------------- #
class TabularPaddingModule:
    def __init__(self, features, seq_features, max_sequence_length: Optional[int] = None):
        self.features = list(features)           # schema.column_names
        self.seq_features = list(seq_features)   # select(schema, Tags.SEQUENCE).column_names
        self.max_sequence_length = max_sequence_length
        self.padding_idx = 0

    def __call__(self, inputs: Dict[str, jax.Array], batch: Dict[str, Optional[Dict[str, jax.Array]]]):
        # 1. resolve max sequence length (host-side, mirrors int(torch.max(...)) in the reference)
        max_len = self.max_sequence_length
        if max_len is None:
            m = 0
            for key, val in inputs.items():
                if key.endswith("__offsets"):
                    m = max(m, int(jnp.max(val[1:] - val[:-1])))
            max_len = m

        # 2. per-feature sequence lengths of the sequential inputs
        seq_lengths: Dict[str, jax.Array] = {}
        dense_padded_cache: Dict[str, jax.Array] = {}
        for key, val in inputs.items():
            if key.endswith("__offsets"):
                seq_lengths[key[: -len("__offsets")]] = (val[1:] - val[:-1]).astype(jnp.int32)
            elif key.endswith("__values"):
                continue
            elif key in self.seq_features:
                padded, lengths = pad_dense_tensor(val, max_len)   # Pallas kernel
                dense_padded_cache[key] = padded
                seq_lengths[key] = lengths

        # 3. consistency check (host sync; mirrors the runtime ValueError of the reference)
        shapes = [np.asarray(s) for s in seq_lengths.values()]
        for s in shapes[1:]:
            if not np.array_equal(s, shapes[0]):
                raise ValueError(
                    "The sequential inputs must have the same length for each row in the "
                    f"batch, but they are different: {shapes}")

        # 4. pad the features
        # Note: ragged features sharing the same offsets + dtype could be stacked into a
        # single pallas_call to amortize launch overhead; kept per-feature here for clarity.
        batch_padded: Dict[str, jax.Array] = {}
        for key, value in batch["features"].items():
            if key.endswith("__offsets"):
                col = key[: -len("__offsets")]
                if col in self.features:
                    batch_padded[col] = pad_ragged_tensor(
                        batch["features"][col + "__values"], value, max_len)
            elif key.endswith("__values"):
                continue
            else:
                if key in self.features and key in seq_lengths:
                    cached = dense_padded_cache.get(key)
                    if cached is None:
                        cached, _ = pad_dense_tensor(value, max_len)
                    batch_padded[key] = cached

        # 5. pad ragged targets, pass through the rest
        targets_padded = None
        if batch.get("targets") is not None:
            targets_padded = {}
            for key, value in batch["targets"].items():
                if key.endswith("__offsets"):
                    col = key[: -len("__offsets")]
                    targets_padded[col] = pad_ragged_tensor(
                        batch["targets"][col + "__values"], value, max_len)
                elif key.endswith("__values"):
                    continue
                else:
                    targets_padded[key] = value

        return {"features": batch_padded, "targets": targets_padded, "sequences": seq_lengths}


# ----------------------------------------------------------------------------- #
# Example / correctness checks
# ----------------------------------------------------------------------------- #
def _ragged_reference(values, offsets, padding_length):
    values = np.asarray(values).reshape(-1)
    offsets = np.asarray(offsets).reshape(-1)
    b = len(offsets) - 1
    out = np.zeros((b, padding_length), dtype=values.dtype)
    for i in range(b):
        row = values[offsets[i]:offsets[i + 1]][:padding_length]
        out[i, : len(row)] = row
    return out


if __name__ == "__main__":
    key = jax.random.PRNGKey(0)
    k1, k2, k3 = jax.random.split(key, 3)

    # ---- test 1: full module forward (small shapes, max_seq_len <= 128 path) -----------------
    MAX_SEQ_LEN = 8
    offsets = jnp.array([0, 3, 5], dtype=jnp.int32)          # batch of 2 rows, lengths [3, 2]

    item_id_values = jnp.array([1, 2, 3, 4, 5], dtype=jnp.int32)
    rating_values = jax.random.uniform(k1, (5, 1), dtype=jnp.float32)   # (N, 1) -> exercises squeeze
    category = jnp.array([[7, 8, 9, 0, 0],
                          [4, 6, 0, 0, 0]], dtype=jnp.int32)            # dense seq feature (B=2, T=5)
    user_age = jnp.array([[25], [40]], dtype=jnp.int32)                  # non-sequential -> dropped
    click_values = jax.random.uniform(k2, (5,), dtype=jnp.float32)       # ragged target

    features = {
        "item_id__values": item_id_values,
        "item_id__offsets": offsets,
        "rating__values": rating_values,
        "rating__offsets": offsets,
        "category": category,
        "user_age": user_age,
    }
    targets = {"click__values": click_values, "click__offsets": offsets}
    batch = {"features": features, "targets": targets}

    module = TabularPaddingModule(
        features=["item_id", "rating", "category", "user_age"],
        seq_features=["item_id", "rating", "category"],
        max_sequence_length=MAX_SEQ_LEN,
    )
    out = module(features, batch)
    out = jax.block_until_ready(out)

    np.testing.assert_array_equal(
        np.asarray(out["features"]["item_id"]),
        _ragged_reference(item_id_values, offsets, MAX_SEQ_LEN))
    np.testing.assert_allclose(
        np.asarray(out["features"]["rating"]),
        _ragged_reference(rating_values, offsets, MAX_SEQ_LEN), rtol=1e-6)
    np.testing.assert_array_equal(
        np.asarray(out["features"]["category"]),
        np.pad(np.asarray(category), ((0, 0), (0, MAX_SEQ_LEN - category.shape[1]))))
    np.testing.assert_allclose(
        np.asarray(out["targets"]["click"]),
        _ragged_reference(click_values, offsets, MAX_SEQ_LEN), rtol=1e-6)
    np.testing.assert_array_equal(np.asarray(out["sequences"]["item_id"]), np.array([3, 2]))
    np.testing.assert_array_equal(np.asarray(out["sequences"]["category"]), np.array([3, 2]))
    assert "user_age" not in out["features"]

    # ---- test 2: ragged kernel alone -- rows crossing 128 boundaries, truncation, empty rows,
    #              multi-chunk output (padding_length > 128) and a partial row block -----------
    row_lens = [130, 7, 0, 250, 50, 1, 128, 127, 129, 0, 33]            # 11 rows, N = 855
    offs2 = np.concatenate([[0], np.cumsum(row_lens)]).astype(np.int32)
    vals2 = jax.random.normal(k3, (int(offs2[-1]),), dtype=jnp.float32)
    PAD2 = 200
    got = jax.block_until_ready(pad_ragged_tensor(vals2, jnp.asarray(offs2), PAD2))
    np.testing.assert_allclose(
        np.asarray(got), _ragged_reference(np.asarray(vals2), offs2, PAD2), rtol=1e-6)

    print("KERNEL_OK")
</pallas_src>

<mosaic_0001>
module attributes {stable_mosaic.version = 11 : i64} {
  func.func @_dense_pad_kernel(%arg0: i32, %arg1: memref<2x5xi32, #tpu.memory_space<vmem>>, %arg2: memref<2x8xi32, #tpu.memory_space<vmem>>, %arg3: memref<2x1xi32, #tpu.memory_space<vmem>>) attributes {dimension_semantics = [#tpu.dimension_semantics<parallel>], iteration_bounds = array<i64: 1>, scalar_prefetch = 0 : i64, scratch_operands = 0 : i64, tpu.core_type = #tpu.core_type<tc>, window_params = [{transform_indices = @transform_0, window_bounds = array<i64: 2, 5>}, {transform_indices = @transform_1, window_bounds = array<i64: 2, 8>}, {transform_indices = @transform_2, window_bounds = array<i64: 2, 1>}]} {
    %c0 = arith.constant 0 : index
    %c0_0 = arith.constant 0 : index
    %0 = vector.load %arg1[%c0, %c0_0] : memref<2x5xi32, #tpu.memory_space<vmem>>, vector<2x5xi32>
    %c0_i32 = arith.constant 0 : i32
    %1 = vector.broadcast %c0_i32 : i32 to vector<2x3xi32>
    %2 = tpu.concatenate %0, %1 in 1 : vector<2x5xi32>, vector<2x3xi32> -> vector<2x8xi32>
    %c0_1 = arith.constant 0 : index
    %c0_2 = arith.constant 0 : index
    %3 = vector.load %arg2[%c0_1, %c0_2] : memref<2x8xi32, #tpu.memory_space<vmem>>, vector<2x8xi32>
    tpu.vector_store %arg2[%c0_1, %c0_2], %2 {strides = array<i32>} : memref<2x8xi32, #tpu.memory_space<vmem>>, vector<2x8xi32>,
    %c0_i32_3 = arith.constant 0 : i32
    %4 = vector.broadcast %c0_i32_3 : i32 to vector<2x5xi32>
    %5 = arith.cmpi ne, %0, %4 : vector<2x5xi32>
    %6 = arith.extui %5 : vector<2x5xi1> to vector<2x5xi32>
    %cst = arith.constant dense<0> : vector<2xi32>
    %7 = vector.multi_reduction <add>, %6, %cst [1] : vector<2x5xi32> to vector<2xi32>
    %8 = vector.shape_cast %7 : vector<2xi32> to vector<2x1xi32>
    %c0_4 = arith.constant 0 : index
    %c0_5 = arith.constant 0 : index
    %9 = vector.load %arg3[%c0_4, %c0_5] : memref<2x1xi32, #tpu.memory_space<vmem>>, vector<2x1xi32>
    tpu.vector_store %arg3[%c0_4, %c0_5], %8 {strides = array<i32>} : memref<2x1xi32, #tpu.memory_space<vmem>>, vector<2x1xi32>,
    return
  }
  func.func @transform_0(%arg0: i32) -> (i32, i32) {
    %c0_i32 = arith.constant 0 : i32
    %c0_i32_0 = arith.constant 0 : i32
    return %arg0, %c0_i32 : i32, i32
  }
  func.func @transform_1(%arg0: i32) -> (i32, i32) {
    %c0_i32 = arith.constant 0 : i32
    %c0_i32_0 = arith.constant 0 : i32
    return %arg0, %c0_i32 : i32, i32
  }
  func.func @transform_2(%arg0: i32) -> (i32, i32) {
    %c0_i32 = arith.constant 0 : i32
    %c0_i32_0 = arith.constant 0 : i32
    return %arg0, %c0_i32 : i32, i32
  }
}

</mosaic_0001>

<bundles_post_ra>
// kernel: tpu_custom_call.1
= control target key start
LH: loop header
LB: loop body
LE: loop exit
PB: predicated region body
PF: predicated region fallthrough
CT: control target
= control target key end

     0   :  { %8 = vsyncpa [#allocation3], 0  ;;  %s139_s0 = inlined_call_operand.hbm [shape: s32[2,5], index: 0, kind: input, shape index: {}]   ;;  %s140_s1 = inlined_call_operand.hbm [shape: s32[2,8], index: 1, kind: output, shape index: {0}]   ;;  %s141_s2 = inlined_call_operand.vmem [shape: s32[2,1], index: 2, kind: output, shape index: {1}]  }
   0x1   :  { %9 = vsyncpa [#allocation4], 0  ;;  %s112_s9 = smov [#allocation2]  }
   0x2   :  { %s16_s10 = sshll.u32 %s112_s9, 4  ;;  %s17_s10 = int_to_ptr.vmem [resolvable:$true] %s16_s10 }
   0x3   :  { %s76_s11 = scalar_lea.vmem %s17_s10, 32  ;;  %p81_p1 = scmp.lt.s32.totalorder %s17_s10, %s17_s10 }
   0x4   :  { %p77_p0 = scmp.ne.s32.totalorder %s17_s10, %s76_s11  ;;  %p82_p2 = scmp.lt.s32.totalorder %s76_s11, %s76_s11 }
   0x6   :  { %p83_p3 = por %p82_p2, %p81_p1 }
   0x8   :  { %p84_p4 = pnand %p83_p3, %p77_p0 }
   0xa   :  { %87 = shalt.err (!%p84_p4)
}
   0xb   :  { %19 = dma.hbm_to_vmem [thread:$0]  %s139_s0, 32, %s17_s10, [#allocation3]  }
   0xc   :  { %108 = dma.done.wait [#allocation3], 32  }
   0xd   :  { %109 = vsyncadd [#allocation3], 4294967264  ;;  %v23_v0 = vld [vmem:[#allocation2] sm:$0x3]  ;;  %vm30_vm0 = vcmask 33792   ;;  %v113_v1 = vmov 0  }
   0xe   :  { %vm28_vm1 = vcmp.ne.s32.totalorder %v23_v0, 0  ;;  %vm24_vm2 = vcmask 39936   ;;  %vm26_vm3 = vcmask 58368   ;;  %s114_s14 = smov [#allocation5]  }
   0xf   :  { %v29_v2 = vsel %vm28_vm1, 1, %v113_v1  ;;  %v25_v8 = vsel %vm24_vm2, %v23_v0, 0  ;;  %s52_s15 = sshll.u32 %s114_s14, 4  ;;  %s53_s15 = int_to_ptr.vmem [resolvable:$true] %s52_s15 }
  0x10   :  { %v31_v3 = vsel %vm30_vm0, %v29_v2, 0  ;;  %27 = vst.msk [vmem:[#allocation5] sm:$0x3] %vm26_vm3, %v25_v8  ;;  %s88_s0 = scalar_lea.vmem %s53_s15, 32  ;;  %p93_p6 = scmp.lt.s32.totalorder %s53_s15, %s53_s15 }
  0x11   :  { %v33_v4 = vshrl.u32 %v31_v3, 16  ;;  %v32_v5 = vand.u32 65535, %v31_v3  ;;  %p89_p5 = scmp.ne.s32.totalorder %s53_s15, %s88_s0  ;;  %p94_p7 = scmp.lt.s32.totalorder %s88_s0, %s88_s0 }
  0x13   :  { %v35_v6 = vcvt.s32.f32 %v33_v4  ;;  %v34_v7 = vcvt.s32.f32 %v32_v5  ;;  %p95_p8 = por %p94_p7, %p93_p6 }
  0x15   :  { %38 = vadd.xlane.f32.xlu0 %v35_v6  ;;  %p96_p9 = pnand %p95_p8, %p89_p5 }
  0x19   :  { %36 = vadd.xlane.f32.xlu0 %v34_v7 }
  0x1a   :  { %99 = shalt.err (!%p96_p9)
}
  0x1b   :  { %55 = dma.vmem_to_hbm [thread:$0]  %s53_s15, 32, %s140_s1, [#allocation4]   ;;  %vm44_vm4 = vcmask 1024  }
  0x9e   :  { %v39_v9 = vpop.xlane.xlu0 %38 }
  0x9f   :  { %v41_v10 = vcvt.f32.s32 %v39_v9 }
  0xa1   :  { %v42_v12 = vshll.u32 %v41_v10, 16 }
  0xa2   :  { %v37_v11 = vpop.xlane.xlu0 %36 }
  0xa3   :  { %v40_v13 = vcvt.f32.s32 %v37_v11 }
  0xa5   :  { %v43_v14 = vadd.s32 %v42_v12, %v40_v13 }
  0xa7   :  { %45 = vst.msk [vmem:[%s141_s2] sm:$0x3] %vm44_vm4, %v43_v14 }
  0xa8   :  { %110 = dma.done.wait [#allocation4], 32  }
  0xa9   :  { %111 = vsyncadd [#allocation4], 4294967264 }
  0xaa   :  { %63 = vsyncpa [#allocation3], 1 }
  0xab   :  { %64 = vsyncpa [#allocation4], 1 }

</bundles_post_ra>
